<compile_context>
chip_gen: v6e
topology: v6e:2x2x1
jax: 0.10.0
libtpu: 0.0.40
codegen_flags: <defaults>
</compile_context>

<pallas_src>
import functools

import jax
import jax.numpy as jnp
from jax.experimental import pallas as pl
from jax.experimental.pallas import tpu as pltpu

H1, H2 = 250, 100  # hidden sizes fixed by the PyTorch module


def _round_up(n: int, m: int) -> int:
    return ((n + m - 1) // m) * m


def _cdiv(a: int, b: int) -> int:
    return -(-a // b)


def _mlp_kernel(x_ref, w1_ref, b1_ref, w2_ref, b2_ref, w3_ref, b3_ref, o_ref):
    """Fused 3-layer MLP: relu(x@W1+b1) @ W2 + b2 -> relu -> @ W3 + b3."""
    x = x_ref[...].astype(w1_ref.dtype)              # f32 -> bf16 cast on-chip

    h1 = jnp.dot(x, w1_ref[...], preferred_element_type=jnp.float32)
    h1 = jnp.maximum(h1 + b1_ref[...], 0.0)          # f32 epilogue
    # Dropout(p=0.2): identity in eval mode (no-op here).
    # TODO(synk): training-mode dropout would need pltpu.prng_seed/prng_random_bits.

    h2 = jnp.dot(h1.astype(w2_ref.dtype), w2_ref[...],
                 preferred_element_type=jnp.float32)
    h2 = jnp.maximum(h2 + b2_ref[...], 0.0)          # f32 epilogue
    # Dropout(p=0.2): identity in eval mode (no-op here).

    out = jnp.dot(h2.astype(w3_ref.dtype), w3_ref[...],
                  preferred_element_type=jnp.float32) + b3_ref[...]
    o_ref[...] = out.astype(o_ref.dtype)


def init_params(key, input_dim: int, out_dim: int, dtype=jnp.float32):
    """Deterministic init mimicking PyTorch nn.Linear default (U(-1/sqrt(fan_in), +))."""
    dims = [(input_dim, H1), (H1, H2), (H2, out_dim)]
    params = []
    for (fan_in, fan_out) in dims:
        key, kw, kb = jax.random.split(key, 3)
        bound = 1.0 / (fan_in ** 0.5)
        w = jax.random.uniform(kw, (fan_in, fan_out), dtype, -bound, bound)
        b = jax.random.uniform(kb, (fan_out,), dtype, -bound, bound)
        params.append((w, b))
    return params


def prepare_params(params, compute_dtype=jnp.bfloat16):
    """One-time: pad weights to lane multiples and cast to bf16.

    Zero-padded rows/columns and exactly-zero padded biases are invariant
    through ReLU and the final bias-add, so padding does not change the math
    (keep the zero-bias invariant if editing).  Biases stay f32 (f32 epilogue).
    Layer-1 K dim (input_dim) stays UNPADDED so x can stream unpadded.
    The output dim IS padded to 128 so the kernel's store is lane-dense.
    """
    (w1, b1), (w2, b2), (w3, b3) = params
    input_dim, out_dim = w1.shape[0], w3.shape[1]
    H1p = _round_up(H1, 128)        # 256
    H2p = _round_up(H2, 128)        # 128
    OUTp = _round_up(out_dim, 128)  # lane-dense output

    w1p = jnp.zeros((input_dim, H1p), compute_dtype).at[:, :H1].set(w1.astype(compute_dtype))
    b1p = jnp.zeros((1, H1p), jnp.float32).at[0, :H1].set(b1.astype(jnp.float32))
    w2p = jnp.zeros((H1p, H2p), compute_dtype).at[:H1, :H2].set(w2.astype(compute_dtype))
    b2p = jnp.zeros((1, H2p), jnp.float32).at[0, :H2].set(b2.astype(jnp.float32))
    w3p = jnp.zeros((H2p, OUTp), compute_dtype).at[:H2, :out_dim].set(w3.astype(compute_dtype))
    b3p = jnp.zeros((1, OUTp), jnp.float32).at[0, :out_dim].set(b3.astype(jnp.float32))
    return w1p, b1p, w2p, b2p, w3p, b3p


@functools.partial(jax.jit, static_argnames=("out_dim",))
def nonlinear_net_forward(x, w1p, b1p, w2p, b2p, w3p, b3p, *, out_dim):
    """Fused MLP forward on pre-padded params: x [B, input_dim] -> [B, out_dim]."""
    B, input_dim = x.shape
    _, H1p = w1p.shape
    H2p, OUTp = w3p.shape

    SUB = 16  # bf16 sublane pack (also a multiple of the f32 sublane tile of 8)

    # Batch tiling:
    #  * small B: one tile (grid=1), just round to the sublane pack.
    #  * B > 256: >= 2 near-balanced tiles (v7x megacore sharding), TB capped
    #    at ~1024 (overhead-amortized, ~86% of roofline per measured data),
    #    tile count chosen so Bp barely exceeds B (no full-tile waste).
    if B <= 256:
        TB = _round_up(B, SUB)
        n_tiles = 1
    else:
        n_tiles = max(2, _cdiv(B, 1024))
        TB = _round_up(_cdiv(B, n_tiles), SUB)
    Bp = TB * n_tiles

    # Only the batch dim is (possibly) padded; feature dim streams unpadded
    # and the f32->bf16 cast happens inside the kernel.
    xp = x if Bp == B else jnp.pad(x, ((0, Bp - B), (0, 0)))

    flops = 2 * Bp * (input_dim * H1p + H1p * H2p + H2p * OUTp)
    bytes_accessed = (
        xp.size * xp.dtype.itemsize
        + sum(a.size * a.dtype.itemsize for a in (w1p, b1p, w2p, b2p, w3p, b3p))
        + Bp * OUTp * 4
    )

    out = pl.pallas_call(
        _mlp_kernel,
        out_shape=jax.ShapeDtypeStruct((Bp, OUTp), jnp.float32),
        grid=(n_tiles,),
        in_specs=[
            pl.BlockSpec((TB, input_dim), lambda i: (i, 0)),  # x: streamed, unpadded K
            pl.BlockSpec(w1p.shape, lambda i: (0, 0)),        # weights: VMEM-resident
            pl.BlockSpec(b1p.shape, lambda i: (0, 0)),
            pl.BlockSpec(w2p.shape, lambda i: (0, 0)),
            pl.BlockSpec(b2p.shape, lambda i: (0, 0)),
            pl.BlockSpec(w3p.shape, lambda i: (0, 0)),
            pl.BlockSpec(b3p.shape, lambda i: (0, 0)),
        ],
        out_specs=pl.BlockSpec((TB, OUTp), lambda i: (i, 0)),  # lane-dense store
        compiler_params=pltpu.CompilerParams(
            dimension_semantics=("parallel",),
            vmem_limit_bytes=32 << 20,
        ),
        cost_estimate=pl.CostEstimate(
            flops=flops, transcendentals=0, bytes_accessed=bytes_accessed),
    )(xp, w1p, b1p, w2p, b2p, w3p, b3p)

    # Single fused slice: drop batch padding and the 128-lane output padding.
    if Bp != B or OUTp != out_dim:
        out = out[:B, :out_dim]
    return out


def _reference_forward(x, params, compute_dtype=jnp.bfloat16):
    """Pure-JAX reference matching the kernel's bf16/f32 mixed precision.

    NOTE: intermediate activations are cast to bf16 between layers, so results
    intentionally diverge slightly from a pure-f32 PyTorch forward (hence the
    1e-2 tolerance below).
    """
    (w1, b1), (w2, b2), (w3, b3) = params
    xc = x.astype(compute_dtype)
    h1 = jnp.maximum(
        jnp.dot(xc, w1.astype(compute_dtype), preferred_element_type=jnp.float32) + b1, 0.0)
    h2 = jnp.maximum(
        jnp.dot(h1.astype(compute_dtype), w2.astype(compute_dtype),
                preferred_element_type=jnp.float32) + b2, 0.0)
    return jnp.dot(h2.astype(compute_dtype), w3.astype(compute_dtype),
                   preferred_element_type=jnp.float32) + b3


if __name__ == "__main__":
    key = jax.random.PRNGKey(0)
    input_dim, out_dim, batch = 32, 10, 8

    kx, kp = jax.random.split(key)
    x = jax.random.normal(kx, (batch, input_dim), jnp.float32)
    params = init_params(kp, input_dim, out_dim)

    padded = prepare_params(params)                  # one-time padding + bf16 cast
    out = nonlinear_net_forward(x, *padded, out_dim=out_dim)
    out = jax.block_until_ready(out)

    ref = _reference_forward(x, params)
    assert out.shape == (batch, out_dim)
    assert jnp.allclose(out, ref, atol=1e-2, rtol=1e-2)

    print("KERNEL_OK")
</pallas_src>

<mosaic_0001>
module attributes {stable_mosaic.version = 11 : i64} {
  func.func @_mlp_kernel(%arg0: i32, %arg1: memref<16x32xf32, #tpu.memory_space<vmem>>, %arg2: memref<32x256xbf16, #tpu.memory_space<vmem>>, %arg3: memref<1x256xf32, #tpu.memory_space<vmem>>, %arg4: memref<256x128xbf16, #tpu.memory_space<vmem>>, %arg5: memref<1x128xf32, #tpu.memory_space<vmem>>, %arg6: memref<128x128xbf16, #tpu.memory_space<vmem>>, %arg7: memref<1x128xf32, #tpu.memory_space<vmem>>, %arg8: memref<16x128xf32, #tpu.memory_space<vmem>>) attributes {dimension_semantics = [#tpu.dimension_semantics<parallel>], iteration_bounds = array<i64: 1>, scalar_prefetch = 0 : i64, scratch_operands = 0 : i64, tpu.core_type = #tpu.core_type<tc>, window_params = [{transform_indices = @transform_0, window_bounds = array<i64: 16, 32>}, {pipeline_mode = #tpu.pipeline_mode<synchronous>, transform_indices = @transform_1, window_bounds = array<i64: 32, 256>}, {pipeline_mode = #tpu.pipeline_mode<synchronous>, transform_indices = @transform_2, window_bounds = array<i64: 1, 256>}, {pipeline_mode = #tpu.pipeline_mode<synchronous>, transform_indices = @transform_3, window_bounds = array<i64: 256, 128>}, {pipeline_mode = #tpu.pipeline_mode<synchronous>, transform_indices = @transform_4, window_bounds = array<i64: 1, 128>}, {pipeline_mode = #tpu.pipeline_mode<synchronous>, transform_indices = @transform_5, window_bounds = array<i64: 128, 128>}, {pipeline_mode = #tpu.pipeline_mode<synchronous>, transform_indices = @transform_6, window_bounds = array<i64: 1, 128>}, {transform_indices = @transform_7, window_bounds = array<i64: 16, 128>}]} {
    %c0 = arith.constant 0 : index
    %c0_0 = arith.constant 0 : index
    %0 = vector.load %arg1[%c0, %c0_0] : memref<16x32xf32, #tpu.memory_space<vmem>>, vector<16x32xf32>
    %1 = arith.truncf %0 : vector<16x32xf32> to vector<16x32xbf16>
    %c0_1 = arith.constant 0 : index
    %c0_2 = arith.constant 0 : index
    %2 = vector.load %arg2[%c0_1, %c0_2] : memref<32x256xbf16, #tpu.memory_space<vmem>>, vector<32x256xbf16>
    %cst = arith.constant dense<0.000000e+00> : vector<16x256xf32>
    %3 = tpu.matmul %1, %2, %cst {dimension_numbers = #tpu.dot_dimension_numbers<[1], [0], [0], [1], [0, 0, 1, 1], [], []>} : vector<16x32xbf16>, vector<32x256xbf16>, vector<16x256xf32> -> vector<16x256xf32>
    %c0_3 = arith.constant 0 : index
    %c0_4 = arith.constant 0 : index
    %4 = vector.load %arg3[%c0_3, %c0_4] : memref<1x256xf32, #tpu.memory_space<vmem>>, vector<1x256xf32>
    %5 = vector.broadcast %4 : vector<1x256xf32> to vector<16x256xf32>
    %6 = arith.addf %3, %5 : vector<16x256xf32>
    %cst_5 = arith.constant 0.000000e+00 : f32
    %7 = vector.broadcast %cst_5 : f32 to vector<16x256xf32>
    %8 = arith.maximumf %6, %7 : vector<16x256xf32>
    %9 = arith.truncf %8 : vector<16x256xf32> to vector<16x256xbf16>
    %c0_6 = arith.constant 0 : index
    %c0_7 = arith.constant 0 : index
    %10 = vector.load %arg4[%c0_6, %c0_7] : memref<256x128xbf16, #tpu.memory_space<vmem>>, vector<256x128xbf16>
    %cst_8 = arith.constant dense<0.000000e+00> : vector<16x128xf32>
    %11 = tpu.matmul %9, %10, %cst_8 {dimension_numbers = #tpu.dot_dimension_numbers<[1], [0], [0], [1], [0, 0, 1, 1], [], []>} : vector<16x256xbf16>, vector<256x128xbf16>, vector<16x128xf32> -> vector<16x128xf32>
    %c0_9 = arith.constant 0 : index
    %c0_10 = arith.constant 0 : index
    %12 = vector.load %arg5[%c0_9, %c0_10] : memref<1x128xf32, #tpu.memory_space<vmem>>, vector<1x128xf32>
    %13 = vector.broadcast %12 : vector<1x128xf32> to vector<16x128xf32>
    %14 = arith.addf %11, %13 : vector<16x128xf32>
    %cst_11 = arith.constant 0.000000e+00 : f32
    %15 = vector.broadcast %cst_11 : f32 to vector<16x128xf32>
    %16 = arith.maximumf %14, %15 : vector<16x128xf32>
    %17 = arith.truncf %16 : vector<16x128xf32> to vector<16x128xbf16>
    %c0_12 = arith.constant 0 : index
    %c0_13 = arith.constant 0 : index
    %18 = vector.load %arg6[%c0_12, %c0_13] : memref<128x128xbf16, #tpu.memory_space<vmem>>, vector<128x128xbf16>
    %cst_14 = arith.constant dense<0.000000e+00> : vector<16x128xf32>
    %19 = tpu.matmul %17, %18, %cst_14 {dimension_numbers = #tpu.dot_dimension_numbers<[1], [0], [0], [1], [0, 0, 1, 1], [], []>} : vector<16x128xbf16>, vector<128x128xbf16>, vector<16x128xf32> -> vector<16x128xf32>
    %c0_15 = arith.constant 0 : index
    %c0_16 = arith.constant 0 : index
    %20 = vector.load %arg7[%c0_15, %c0_16] : memref<1x128xf32, #tpu.memory_space<vmem>>, vector<1x128xf32>
    %21 = vector.broadcast %20 : vector<1x128xf32> to vector<16x128xf32>
    %22 = arith.addf %19, %21 : vector<16x128xf32>
    %c0_17 = arith.constant 0 : index
    %c0_18 = arith.constant 0 : index
    %23 = vector.load %arg8[%c0_17, %c0_18] : memref<16x128xf32, #tpu.memory_space<vmem>>, vector<16x128xf32>
    tpu.vector_store %arg8[%c0_17, %c0_18], %22 {strides = array<i32>} : memref<16x128xf32, #tpu.memory_space<vmem>>, vector<16x128xf32>,
    return
  }
  func.func @transform_0(%arg0: i32) -> (i32, i32) {
    %c0_i32 = arith.constant 0 : i32
    %c0_i32_0 = arith.constant 0 : i32
    return %arg0, %c0_i32 : i32, i32
  }
  func.func @transform_1(%arg0: i32) -> (i32, i32) {
    %c0_i32 = arith.constant 0 : i32
    %c0_i32_0 = arith.constant 0 : i32
    %c0_i32_1 = arith.constant 0 : i32
    return %c0_i32, %c0_i32_0 : i32, i32
  }
  func.func @transform_2(%arg0: i32) -> (i32, i32) {
    %c0_i32 = arith.constant 0 : i32
    %c0_i32_0 = arith.constant 0 : i32
    %c0_i32_1 = arith.constant 0 : i32
    return %c0_i32, %c0_i32_0 : i32, i32
  }
  func.func @transform_3(%arg0: i32) -> (i32, i32) {
    %c0_i32 = arith.constant 0 : i32
    %c0_i32_0 = arith.constant 0 : i32
    %c0_i32_1 = arith.constant 0 : i32
    return %c0_i32, %c0_i32_0 : i32, i32
  }
  func.func @transform_4(%arg0: i32) -> (i32, i32) {
    %c0_i32 = arith.constant 0 : i32
    %c0_i32_0 = arith.constant 0 : i32
    %c0_i32_1 = arith.constant 0 : i32
    return %c0_i32, %c0_i32_0 : i32, i32
  }
  func.func @transform_5(%arg0: i32) -> (i32, i32) {
    %c0_i32 = arith.constant 0 : i32
    %c0_i32_0 = arith.constant 0 : i32
    %c0_i32_1 = arith.constant 0 : i32
    return %c0_i32, %c0_i32_0 : i32, i32
  }
  func.func @transform_6(%arg0: i32) -> (i32, i32) {
    %c0_i32 = arith.constant 0 : i32
    %c0_i32_0 = arith.constant 0 : i32
    %c0_i32_1 = arith.constant 0 : i32
    return %c0_i32, %c0_i32_0 : i32, i32
  }
  func.func @transform_7(%arg0: i32) -> (i32, i32) {
    %c0_i32 = arith.constant 0 : i32
    %c0_i32_0 = arith.constant 0 : i32
    return %arg0, %c0_i32 : i32, i32
  }
}

</mosaic_0001>

<bundles_post_ra>
// kernel: nonlinear_net_forward.1
= control target key start
LH: loop header
LB: loop body
LE: loop exit
PB: predicated region body
PF: predicated region fallthrough
CT: control target
= control target key end

     0   :  { %12 = vsyncpa [#allocation3], 0  ;;  %s725_s0 = inlined_call_operand.vmem [shape: f32[16,32], index: 0, kind: input, shape index: {}]   ;;  %s726_s1 = inlined_call_operand.hbm [shape: bf16[32,256], index: 1, kind: input, shape index: {}]   ;;  %s727_s2 = inlined_call_operand.vmem [shape: f32[1,256], index: 2, kind: input, shape index: {}]   ;;  %s728_s3 = inlined_call_operand.hbm [shape: bf16[256,128], index: 3, kind: input, shape index: {}]   ;;  %s729_s4 = inlined_call_operand.vmem [shape: f32[1,128], index: 4, kind: input, shape index: {}]   ;;  %s730_s5 = inlined_call_operand.hbm [shape: bf16[128,128], index: 5, kind: input, shape index: {}]   ;;  %s731_s6 = inlined_call_operand.vmem [shape: f32[1,128], index: 6, kind: input, shape index: {}]   ;;  %s732_s7 = inlined_call_operand.vmem [shape: f32[16,128], index: 7, kind: output, shape index: {}]  }
   0x1   :  { %13 = vsyncpa [#allocation5], 0  ;;  %s645_s24 = smov [#allocation4]  }
   0x2   :  { %s35_s25 = sshll.u32 %s645_s24, 4  ;;  %s36_s25 = int_to_ptr.vmem [resolvable:$true] %s35_s25 }
   0x3   :  { %s589_s26 = scalar_lea.vmem %s36_s25, 2048  ;;  %p594_p1 = scmp.lt.s32.totalorder %s36_s25, %s36_s25 }
   0x4   :  { %p590_p0 = scmp.ne.s32.totalorder %s36_s25, %s589_s26  ;;  %p595_p2 = scmp.lt.s32.totalorder %s589_s26, %s589_s26 }
   0x6   :  { %p596_p3 = por %p595_p2, %p594_p1 }
   0x8   :  { %p597_p4 = pnand %p596_p3, %p590_p0 }
   0xa   :  { %600 = shalt.err (!%p597_p4)
}
   0xb   :  { %s646_s27 = smov 64   ;;  %s647_s28 = smov 4  }
   0xc   :  { %41 = dma.hbm_to_vmem [thread:$0]  %s728_s3, 2048, %s36_s25, [#allocation5], %s646_s27, %s646_s27, %s647_s28  }
   0xd   :  { %s648_s8 = smov [#allocation2]  }
   0xe   :  { %s21_s9 = sshll.u32 %s648_s8, 4  ;;  %s22_s9 = int_to_ptr.vmem [resolvable:$true] %s21_s9 }
   0xf   :  { %s609_s10 = scalar_lea.vmem %s22_s9, 512  ;;  %p614_p6 = scmp.lt.s32.totalorder %s22_s9, %s22_s9 }
  0x10   :  { %p610_p5 = scmp.ne.s32.totalorder %s22_s9, %s609_s10  ;;  %p615_p7 = scmp.lt.s32.totalorder %s609_s10, %s609_s10 }
  0x12   :  { %p616_p8 = por %p615_p7, %p614_p6 }
  0x14   :  { %p617_p9 = pnand %p616_p8, %p610_p5 }
  0x16   :  { %620 = shalt.err (!%p617_p9)
}
  0x17   :  { %s649_s11 = smov 128   ;;  %s650_s12 = smov 8  }
  0x18   :  { %27 = dma.hbm_to_vmem [thread:$0]  %s726_s1, 512, %s22_s9, [#allocation3], %s649_s11, %s649_s11, %s650_s12  }
  0x19   :  { %s651_s15 = smov [#allocation6]  }
  0x1a   :  { %s49_s16 = sshll.u32 %s651_s15, 4  ;;  %s50_s16 = int_to_ptr.vmem [resolvable:$true] %s49_s16 }
  0x1b   :  { %s629_s3 = scalar_lea.vmem %s50_s16, 1024  ;;  %p634_p11 = scmp.lt.s32.totalorder %s50_s16, %s50_s16 }
  0x1c   :  { %p630_p10 = scmp.ne.s32.totalorder %s50_s16, %s629_s3  ;;  %p635_p12 = scmp.lt.s32.totalorder %s629_s3, %s629_s3 }
  0x1e   :  { %p636_p13 = por %p635_p12, %p634_p11 }
  0x20   :  { %p637_p0 = pnand %p636_p13, %p630_p10 }
  0x22   :  { %640 = shalt.err (!%p637_p0)
}
  0x23   :  { %55 = dma.hbm_to_vmem [thread:$0]  %s730_s5, 1024, %s50_s16, [#allocation5], %s646_s27, %s646_s27, %s647_s28  }
  0x24   :  { %641 = dma.done.wait [#allocation3], 512  }
  0x25   :  { %642 = vsyncadd [#allocation3], 4294966784 }
  0x26   :  { %643 = dma.done.wait [#allocation5], 3072  }
  0x27   :  { %644 = vsyncadd [#allocation5], 4294964224  ;;  %v652_v0 = vmov 0   ;;  %v551_v1 = vld [vmem:[#allocation2 + $0x14] ss:$8 sps:$4 sm:$0xff]   ;;  %v68_v5 = vld [vmem:[%s725_s0] sm:$0xff]  ;;  %v77_v29 = vlaneseq }
  0x28   :  { %143 = vmatprep.mubr.bf16.mxu0 %v652_v0  ;;  %v553_v2 = vld [vmem:[#allocation2 + $0x10] ss:$8 sps:$4 sm:$0xff]   ;;  %123 = vmatprep.subr.bf16.mxu0 %v551_v1  ;;  %v554_v3 = vld [vmem:[#allocation2 + $0x4] ss:$8 sps:$4 sm:$0xff]   ;;  %v556_v4 = vld [vmem:[#allocation2] ss:$8 sps:$4 sm:$0xff]  }
  0x29   :  { %124 = vmatpush1.bf16.msra.mxu0 %v553_v2  ;;  %v69_v6 = vld [vmem:[%s725_s0 + $0x8] sm:$0xff]  ;;  %v557_v7 = vld [vmem:[#allocation4 + $0x78] sm:$0xff]   ;;  %v559_v10 = vld [vmem:[#allocation4 + $0x70] sm:$0xff]   ;;  %vm107_vm0 = vcmask 261120   ;;  %v653_v25 = vmov 0.0   ;;  %v78_v30 = vshrl.u32 %v77_v29, 7 }
  0x2a   :  { %125 = vmatprep.subr.bf16.mxu0 %v554_v3  ;;  %v558_v8 = vld [vmem:[#allocation4 + $0x38] sm:$0xff]   ;;  %v70_v9 = vpack.c.bf16 %v69_v6, %v68_v5  ;;  %490 = vmatprep.subr.bf16.mxu1 %v557_v7  ;;  %v560_v11 = vld [vmem:[#allocation4 + $0x30] sm:$0xff]   ;;  %v561_v12 = vld [vmem:[#allocation4 + $0x68] sm:$0xff]   ;;  %vm654_vm1 = vmmov 0  }
  0x2b   :  { %491 = vmatpush3.bf16.msra.mxu1 %v558_v8  ;;  %v562_v13 = vld [vmem:[#allocation4 + $0x28] sm:$0xff]   ;;  %v563_v14 = vld [vmem:[#allocation4 + $0x60] sm:$0xff]   ;;  %v565_v16 = vld [vmem:[#allocation4 + $0x58] sm:$0xff]   ;;  %v83_v31 = vsub.s32 1, %v78_v30  ;;  %v79_v32 = vsub.s32 0, %v78_v30 }
  0x2c   :  { %492 = vmatprep.subr.bf16.mxu1 %v559_v10  ;;  %v564_v15 = vld [vmem:[#allocation4 + $0x20] sm:$0xff]   ;;  %v566_v17 = vld [vmem:[#allocation4 + $0x18] sm:$0xff]   ;;  %v567_v18 = vld [vmem:[#allocation4 + $0x50] sm:$0xff]  }
  0x2d   :  { %126 = vmatpush1.bf16.msra.mxu0 %v556_v4  ;;  %v568_v19 = vld [vmem:[#allocation4 + $0x10] sm:$0xff]   ;;  %v569_v20 = vld [vmem:[#allocation4 + $0x48] sm:$0xff]   ;;  %v571_v22 = vld [vmem:[#allocation4 + $0x40] sm:$0xff]  }
  0x2e   :  { %v570_v21 = vld [vmem:[#allocation4 + $0x8] sm:$0xff]   ;;  %v572_v23 = vld [vmem:[#allocation4] sm:$0xff]   ;;  %v573_v24 = vld [vmem:[#allocation6 + $0x38] sm:$0xff]   ;;  %521 = vmatprep.subr.bf16.mxu0 %v653_v25 }
  0x2f   :  { %493 = vmatpush3.bf16.msra.mxu1 %v560_v11  ;;  %v574_v26 = vld [vmem:[#allocation6 + $0x30] sm:$0xff]   ;;  %v575_v27 = vld [vmem:[#allocation6 + $0x28] sm:$0xff]   ;;  %v576_v28 = vld [vmem:[#allocation6 + $0x20] sm:$0xff]  }
  0x30   :  { %463 = vmatmul.mubr.msk.bf16.vlgmr.msra.gmra.mxu0 %vm107_vm0, %v70_v9  ;;  %494 = vmatprep.subr.bf16.mxu1 %v561_v12  ;;  %v75_v33 = vld [vmem:[%s727_s2] sm:$0x3]  ;;  %v577_v50 = vld [vmem:[#allocation6 + $0x18] sm:$0xff]   ;;  %v578_v51 = vld [vmem:[#allocation6 + $0x10] sm:$0xff]  }
  0x31   :  { %522 = vmatpush3.bf16.msra.mxu0 %v573_v24  ;;  %v84_v35 = vrot.slane %v75_v33, %v83_v31  ;;  %v80_v36 = vrot.slane %v75_v33, %v79_v32  ;;  %v579_v52 = vld [vmem:[#allocation6 + $0x8] sm:$0xff]   ;;  %v580_v53 = vld [vmem:[#allocation6] sm:$0xff]   ;;  %537 = vmatprep.mubr.msk.bf16.mxu0 %vm654_vm1, %v653_v25 }
  0x32   :  { %523 = vmatprep.subr.bf16.mxu0 %v653_v25  ;;  %v464_v57 = vld [vmem:[%s729_s4] ss:$0 sm:$0xff] }
  0x33   :  { %495 = vmatpush3.bf16.msra.mxu1 %v562_v13  ;;  %v481_v2 = vld [vmem:[%s731_s6] ss:$0 sm:$0xff] }
  0x34   :  { %496 = vmatprep.subr.bf16.mxu1 %v563_v14 }
  0x35   :  { %524 = vmatpush3.bf16.msra.mxu0 %v574_v26 }
  0x36   :  { %525 = vmatprep.subr.bf16.mxu0 %v653_v25 }
  0x37   :  { %497 = vmatpush3.bf16.msra.mxu1 %v564_v15 }
  0x38   :  { %498 = vmatprep.subr.bf16.mxu1 %v565_v16 }
  0x39   :  { %526 = vmatpush3.bf16.msra.mxu0 %v575_v27 }
  0x3a   :  { %527 = vmatprep.subr.bf16.mxu0 %v653_v25 }
  0x3b   :  { %499 = vmatpush3.bf16.msra.mxu1 %v566_v17 }
  0x3c   :  { %500 = vmatprep.subr.bf16.mxu1 %v567_v18 }
  0x3d   :  { %528 = vmatpush3.bf16.msra.mxu0 %v576_v28 }
  0x3e   :  { %529 = vmatprep.subr.bf16.mxu0 %v653_v25 }
  0x3f   :  { %501 = vmatpush3.bf16.msra.mxu1 %v568_v19 }
  0x40   :  { %502 = vmatprep.subr.bf16.mxu1 %v569_v20 }
  0x41   :  { %530 = vmatpush3.bf16.msra.mxu0 %v577_v50 }
  0x42   :  { %531 = vmatprep.subr.bf16.mxu0 %v653_v25 }
  0x43   :  { %503 = vmatpush3.bf16.msra.mxu1 %v570_v21 }
  0x44   :  { %504 = vmatprep.subr.bf16.mxu1 %v571_v22 }
  0x45   :  { %532 = vmatpush3.bf16.msra.mxu0 %v578_v51 }
  0x46   :  { %533 = vmatprep.subr.bf16.mxu0 %v653_v25 }
  0x47   :  { %505 = vmatpush3.bf16.msra.mxu1 %v572_v23 }
  0x49   :  { %534 = vmatpush3.bf16.msra.mxu0 %v579_v52 }
  0x4a   :  { %535 = vmatprep.subr.bf16.mxu0 %v653_v25 }
  0x4d   :  { %536 = vmatpush3.bf16.msra.mxu0 %v580_v53 }
  0xf0   :  { %v145_v34 = vpop.f32.mrf.mxu0 }
  0xf1   :  { %v146_v41 = vadd.f32 %v145_v34, %v80_v36 }
  0xf2   :  { %v147_v37 = vpop.f32.mrf.mxu0 }
  0xf3   :  { %v148_v39 = vadd.f32 %v147_v37, %v84_v35  ;;  %v154_v47 = vmax.f32 %v146_v41, 0.0 }
  0xf4   :  { %v149_v38 = vpop.f32.mrf.mxu0 }
  0xf5   :  { %v150_v40 = vadd.f32 %v149_v38, %v80_v36  ;;  %v155_v45 = vmax.f32 %v148_v39, 0.0 }
  0xf6   :  { %v151_v42 = vpop.f32.mrf.mxu0 }
  0xf7   :  { %v152_v43 = vadd.f32 %v151_v42, %v84_v35  ;;  %v156_v44 = vmax.f32 %v150_v40, 0.0 }
  0xf9   :  { %v157_v46 = vmax.f32 %v152_v43, 0.0  ;;  %v158_v49 = vpack.c.bf16 %v156_v44, %v154_v47 }
  0xfb   :  { %v159_v48 = vpack.c.bf16 %v157_v46, %v155_v45 }
  0xfd   :  { %327 = vmatprep.mubr.bf16.mxu1 %v159_v48 }
  0xfe   :  { %328 = vmatmul.mubr.bf16.vlgmr.msra.gmra.mxu1 %v158_v49 }
 0x1be   :  { %v506_v54 = vpop.f32.mrf.mxu1 }
 0x1c0   :  { %v507_v55 = vpop.f32.mrf.mxu1 }
 0x1c1   :  { %v508_v56 = vadd.f32 %v507_v55, %v506_v54 }
 0x1c2   :  { %v509_v58 = vpop.f32.mrf.mxu1 }
 0x1c3   :  { %v330_v60 = vadd.f32 %v508_v56, %v464_v57 }
 0x1c4   :  { %v510_v59 = vpop.f32.mrf.mxu1 }
 0x1c5   :  { %v511_v61 = vadd.f32 %v510_v59, %v509_v58  ;;  %v336_v63 = vmax.f32 %v330_v60, 0.0 }
 0x1c7   :  { %v333_v62 = vadd.f32 %v511_v61, %v464_v57 }
 0x1c9   :  { %v337_v0 = vmax.f32 %v333_v62, 0.0 }
 0x1cb   :  { %v338_v1 = vpack.c.bf16 %v337_v0, %v336_v63 }
 0x1cd   :  { %538 = vmatmul.mubr.bf16.vlgmr.msra.gmra.mxu0 %v338_v1 }
 0x28d   :  { %v444_v3 = vpop.f32.mrf.mxu0 }
 0x28e   :  { %v445_v4 = vadd.f32 %v481_v2, %v444_v3 }
 0x28f   :  { %v539_v5 = vpop.f32.mrf.mxu0 }
 0x290   :  { %451 = vst [vmem:[%s732_s7] sm:$0xff] %v445_v4 }
 0x291   :  { %v447_v6 = vpop.f32.mrf.mxu0 }
 0x292   :  { %v448_v7 = vadd.f32 %v481_v2, %v447_v6 }
 0x293   :  { %v540_v8 = vpop.f32.mrf.mxu0 }
 0x294   :  { %452 = vst [vmem:[%s732_s7 + $0x8] sm:$0xff] %v448_v7 }
 0x295   :  { %457 = vsyncpa [#allocation3], 1 }
 0x296   :  { %458 = vsyncpa [#allocation5], 1 }

</bundles_post_ra>
